<compile_context>
chip_gen: v6e
topology: v6e:2x2x1
jax: 0.10.0
libtpu: 0.0.40
codegen_flags: <defaults>
</compile_context>

<pallas_src>
import functools

import jax
import jax.numpy as jnp
from jax.experimental import pallas as pl
from jax.experimental.pallas import tpu as pltpu

Z_DIM = 128
C_DIM = 8                      # "4 + 4" in the original module
GOAL_DIM = 44
IN_DIM = Z_DIM + C_DIM + GOAL_DIM   # 180
IN_PAD = 256                   # lane-dense fc1 K (zero-padded 180 -> 256)
H1_DIM = 512
H2_DIM = 128
OUT_DIM = 44
OUT_PAD = 128                  # lane-dense output slab (sliced back to 44)

TB_MAX = 2048                  # batch rows per grid step (amortizes per-step overhead)
MIN_PALLAS_BATCH = 257         # below this, fused XLA matmuls beat a kernel launch


def _round_up(x, m):
    return (x + m - 1) // m * m


def _decoder_kernel(x_ref, w1_ref, b1_ref, w2_ref, b2_ref, w3_ref, b3_ref, o_ref):
    # fc1 + relu: single lane-dense K=256 dot (input & W1 rows zero-padded).
    h1 = jnp.dot(x_ref[...], w1_ref[...], preferred_element_type=jnp.float32)
    h1 = jnp.maximum(h1 + b1_ref[...], 0.0)

    # Dropout(p=0.5): identity in eval / inference mode.
    # TODO(synk): training-mode dropout would need pltpu.prng_seed + prng_random_bits.

    # fc2 + relu (bf16 operands, f32 accumulate).
    h2 = jnp.dot(h1.astype(jnp.bfloat16), w2_ref[...],
                 preferred_element_type=jnp.float32)
    h2 = jnp.maximum(h2 + b2_ref[...], 0.0)

    # out (no activation); W3/b3 zero-padded 44 -> 128 lanes; bf16 store.
    y = jnp.dot(h2.astype(jnp.bfloat16), w3_ref[...],
                preferred_element_type=jnp.float32)
    o_ref[...] = (y + b3_ref[...]).astype(o_ref.dtype)


def prepare_decoder_params(params):
    """One-time conversion of f32 [in,out] params into kernel-ready layout.

    Zero-pads W1 rows 180 -> 256 (matches the padded input slab), casts weights
    to bf16, keeps biases in f32 as [1, N], and zero-pads W3/b3 to 128 output
    lanes.  Do this once at model-load time, not per call.
    """
    w1, b1, w2, b2, w3, b3 = params
    w1p = jnp.zeros((IN_PAD, H1_DIM), jnp.bfloat16).at[:IN_DIM].set(
        w1.astype(jnp.bfloat16))
    w3p = jnp.zeros((H2_DIM, OUT_PAD), jnp.bfloat16).at[:, :OUT_DIM].set(
        w3.astype(jnp.bfloat16))
    b3p = jnp.zeros((1, OUT_PAD), jnp.float32).at[:, :OUT_DIM].set(
        b3.reshape(1, -1).astype(jnp.float32))
    return (w1p,
            b1.reshape(1, -1).astype(jnp.float32),
            w2.astype(jnp.bfloat16),
            b2.reshape(1, -1).astype(jnp.float32),
            w3p, b3p)


@functools.partial(jax.jit, static_argnames=("tb_max", "min_pallas_batch"))
def cnn_decoder_forward(z, c, init_goal, kernel_params,
                        tb_max=TB_MAX, min_pallas_batch=MIN_PALLAS_BATCH):
    """Pallas implementation of CNNDecoder.forward (eval mode)."""
    w1p, b1, w2, b2, w3p, b3p = kernel_params
    B = z.shape[0]

    # Single bf16 input slab [B, 180] (padded to 256 below for the kernel path).
    x = jnp.concatenate([z, c, init_goal], axis=1).astype(jnp.bfloat16)

    if B < min_pallas_batch:
        # Tiny batches are pure launch/pipeline-prologue latency in a kernel;
        # use a fused XLA matmul chain with identical numerics instead.
        h1 = jnp.maximum(
            jnp.dot(x, w1p[:IN_DIM], preferred_element_type=jnp.float32) + b1, 0.0)
        h2 = jnp.maximum(
            jnp.dot(h1.astype(jnp.bfloat16), w2,
                    preferred_element_type=jnp.float32) + b2, 0.0)
        y = jnp.dot(h2.astype(jnp.bfloat16), w3p,
                    preferred_element_type=jnp.float32) + b3p
        return y[:, :OUT_DIM]

    # Batch tile: clamp to ceil(B/2) so there are always >= 2 grid steps
    # (v7x megacore needs >= 2 to shard); rows multiple of 16 for bf16 packing.
    tb = min(tb_max, _round_up(pl.cdiv(B, 2), 16))
    b_pad = _round_up(B, tb)
    grid = (b_pad // tb,)

    # Pad rows B -> b_pad and lanes 180 -> 256 in one pass.
    x = jnp.pad(x, ((0, b_pad - B), (0, IN_PAD - IN_DIM)))

    # Activations / output: tiled over the batch grid axis.
    act_spec = pl.BlockSpec((tb, IN_PAD), lambda i: (i, 0))
    out_spec = pl.BlockSpec((tb, OUT_PAD), lambda i: (i, 0))
    # Weights / biases: constant index_map -> resident in VMEM across steps;
    # single-buffered (no dead second buffer).
    res = lambda shape: pl.BlockSpec(shape, lambda i: (0, 0),
                                     pipeline_mode=pl.Buffered(1))

    flops = 2 * b_pad * (IN_PAD * H1_DIM + H1_DIM * H2_DIM + H2_DIM * OUT_PAD)
    bytes_accessed = (
        2 * (IN_PAD * H1_DIM + H1_DIM * H2_DIM + H2_DIM * OUT_PAD)   # bf16 weights
        + 4 * (H1_DIM + H2_DIM + OUT_PAD)                            # f32 biases
        + 2 * b_pad * IN_PAD                                         # bf16 input slab
        + 2 * b_pad * OUT_PAD)                                       # bf16 output slab

    out = pl.pallas_call(
        _decoder_kernel,
        out_shape=jax.ShapeDtypeStruct((b_pad, OUT_PAD), jnp.bfloat16),
        grid_spec=pltpu.PrefetchScalarGridSpec(
            num_scalar_prefetch=0,
            grid=grid,
            in_specs=[
                act_spec,
                res((IN_PAD, H1_DIM)), res((1, H1_DIM)),
                res((H1_DIM, H2_DIM)), res((1, H2_DIM)),
                res((H2_DIM, OUT_PAD)), res((1, OUT_PAD)),
            ],
            out_specs=out_spec,
        ),
        compiler_params=pltpu.CompilerParams(
            dimension_semantics=("parallel",),          # megacore-shard batch (v7x)
            vmem_limit_bytes=32 * 1024 * 1024,          # ~10 MB used at tb=2048; safe on v5e/v6e/v7x
        ),
        cost_estimate=pl.CostEstimate(
            flops=flops, transcendentals=0, bytes_accessed=bytes_accessed),
    )(x, w1p, b1, w2, b2, w3p, b3p)

    # Fused slice + f32 upcast: one pass over the output slab.
    return out[:B, :OUT_DIM].astype(jnp.float32)


def init_params(key):
    """Deterministic parameter init (shapes match the nn.Linear layers), f32."""
    ks = jax.random.split(key, 6)

    def linear(kw, kb, fan_in, fan_out):
        bound = 1.0 / jnp.sqrt(fan_in)
        w = jax.random.uniform(kw, (fan_in, fan_out), jnp.float32, -bound, bound)
        b = jax.random.uniform(kb, (fan_out,), jnp.float32, -bound, bound)
        return w, b

    w1, b1 = linear(ks[0], ks[1], IN_DIM, H1_DIM)
    w2, b2 = linear(ks[2], ks[3], H1_DIM, H2_DIM)
    w3, b3 = linear(ks[4], ks[5], H2_DIM, OUT_DIM)
    return (w1, b1, w2, b2, w3, b3)


def reference_forward(z, c, init_goal, params):
    """Pure-JAX reference with the same bf16-weight / f32-accumulate precision."""
    w1, b1, w2, b2, w3, b3 = params
    x = jnp.concatenate([z, c, init_goal], axis=1).astype(jnp.bfloat16)
    h1 = jnp.maximum(
        jnp.dot(x, w1.astype(jnp.bfloat16), preferred_element_type=jnp.float32) + b1, 0.0)
    h2 = jnp.maximum(
        jnp.dot(h1.astype(jnp.bfloat16), w2.astype(jnp.bfloat16),
                preferred_element_type=jnp.float32) + b2, 0.0)
    return jnp.dot(h2.astype(jnp.bfloat16), w3.astype(jnp.bfloat16),
                   preferred_element_type=jnp.float32) + b3


if __name__ == "__main__":
    key = jax.random.PRNGKey(0)
    kp, kz, kc, kg = jax.random.split(key, 4)

    params = init_params(kp)
    kparams = prepare_decoder_params(params)

    # --- small-shape run THROUGH THE PALLAS KERNEL (force past the tiny-batch
    #     XLA fast path so the kernel itself is exercised at B=2) ---
    B = 2
    z = jax.random.normal(kz, (B, Z_DIM), jnp.float32)
    c = jax.random.normal(kc, (B, C_DIM), jnp.float32)
    init_goal = jax.random.normal(kg, (B, GOAL_DIM), jnp.float32)

    out = jax.block_until_ready(
        cnn_decoder_forward(z, c, init_goal, kparams, min_pallas_batch=0))
    ref = reference_forward(z, c, init_goal, params)
    assert out.shape == (B, OUT_DIM), out.shape
    assert jnp.allclose(out, ref, atol=2e-2, rtol=2e-2), \
        float(jnp.max(jnp.abs(out - ref)))

    # --- default dispatch at B=2: tiny-batch fused-XLA fast path ---
    out_fast = jax.block_until_ready(cnn_decoder_forward(z, c, init_goal, kparams))
    assert out_fast.shape == (B, OUT_DIM), out_fast.shape
    assert jnp.allclose(out_fast, ref, atol=2e-2, rtol=2e-2), \
        float(jnp.max(jnp.abs(out_fast - ref)))

    # --- multi-tile run: exercises the batch grid (>=2 steps, v7x megacore)
    #     and the ragged-batch padding path ---
    B2 = 600
    kz2, kc2, kg2 = jax.random.split(jax.random.PRNGKey(1), 3)
    z2 = jax.random.normal(kz2, (B2, Z_DIM), jnp.float32)
    c2 = jax.random.normal(kc2, (B2, C_DIM), jnp.float32)
    g2 = jax.random.normal(kg2, (B2, GOAL_DIM), jnp.float32)

    out2 = jax.block_until_ready(cnn_decoder_forward(z2, c2, g2, kparams))
    ref2 = reference_forward(z2, c2, g2, params)
    assert out2.shape == (B2, OUT_DIM), out2.shape
    assert jnp.allclose(out2, ref2, atol=2e-2, rtol=2e-2), \
        float(jnp.max(jnp.abs(out2 - ref2)))

    print("KERNEL_OK")
</pallas_src>

<mosaic_0001>
module attributes {stable_mosaic.version = 11 : i64} {
  func.func @_decoder_kernel(%arg0: i32, %arg1: memref<16x256xbf16, #tpu.memory_space<vmem>>, %arg2: memref<256x512xbf16, #tpu.memory_space<vmem>>, %arg3: memref<1x512xf32, #tpu.memory_space<vmem>>, %arg4: memref<512x128xbf16, #tpu.memory_space<vmem>>, %arg5: memref<1x128xf32, #tpu.memory_space<vmem>>, %arg6: memref<128x128xbf16, #tpu.memory_space<vmem>>, %arg7: memref<1x128xf32, #tpu.memory_space<vmem>>, %arg8: memref<16x128xbf16, #tpu.memory_space<vmem>>) attributes {dimension_semantics = [#tpu.dimension_semantics<parallel>], iteration_bounds = array<i64: 1>, scalar_prefetch = 0 : i64, scratch_operands = 0 : i64, tpu.core_type = #tpu.core_type<tc>, window_params = [{transform_indices = @transform_0, window_bounds = array<i64: 16, 256>}, {pipeline_mode = #tpu.pipeline_mode<synchronous>, transform_indices = @transform_1, window_bounds = array<i64: 256, 512>}, {pipeline_mode = #tpu.pipeline_mode<synchronous>, transform_indices = @transform_2, window_bounds = array<i64: 1, 512>}, {pipeline_mode = #tpu.pipeline_mode<synchronous>, transform_indices = @transform_3, window_bounds = array<i64: 512, 128>}, {pipeline_mode = #tpu.pipeline_mode<synchronous>, transform_indices = @transform_4, window_bounds = array<i64: 1, 128>}, {pipeline_mode = #tpu.pipeline_mode<synchronous>, transform_indices = @transform_5, window_bounds = array<i64: 128, 128>}, {pipeline_mode = #tpu.pipeline_mode<synchronous>, transform_indices = @transform_6, window_bounds = array<i64: 1, 128>}, {transform_indices = @transform_7, window_bounds = array<i64: 16, 128>}]} {
    %c0 = arith.constant 0 : index
    %c0_0 = arith.constant 0 : index
    %0 = vector.load %arg1[%c0, %c0_0] : memref<16x256xbf16, #tpu.memory_space<vmem>>, vector<16x256xbf16>
    %c0_1 = arith.constant 0 : index
    %c0_2 = arith.constant 0 : index
    %1 = vector.load %arg2[%c0_1, %c0_2] : memref<256x512xbf16, #tpu.memory_space<vmem>>, vector<256x512xbf16>
    %cst = arith.constant dense<0.000000e+00> : vector<16x512xf32>
    %2 = tpu.matmul %0, %1, %cst {dimension_numbers = #tpu.dot_dimension_numbers<[1], [0], [0], [1], [0, 0, 1, 1], [], []>} : vector<16x256xbf16>, vector<256x512xbf16>, vector<16x512xf32> -> vector<16x512xf32>
    %c0_3 = arith.constant 0 : index
    %c0_4 = arith.constant 0 : index
    %3 = vector.load %arg3[%c0_3, %c0_4] : memref<1x512xf32, #tpu.memory_space<vmem>>, vector<1x512xf32>
    %4 = vector.broadcast %3 : vector<1x512xf32> to vector<16x512xf32>
    %5 = arith.addf %2, %4 : vector<16x512xf32>
    %cst_5 = arith.constant 0.000000e+00 : f32
    %6 = vector.broadcast %cst_5 : f32 to vector<16x512xf32>
    %7 = arith.maximumf %5, %6 : vector<16x512xf32>
    %8 = arith.truncf %7 : vector<16x512xf32> to vector<16x512xbf16>
    %c0_6 = arith.constant 0 : index
    %c0_7 = arith.constant 0 : index
    %9 = vector.load %arg4[%c0_6, %c0_7] : memref<512x128xbf16, #tpu.memory_space<vmem>>, vector<512x128xbf16>
    %cst_8 = arith.constant dense<0.000000e+00> : vector<16x128xf32>
    %10 = tpu.matmul %8, %9, %cst_8 {dimension_numbers = #tpu.dot_dimension_numbers<[1], [0], [0], [1], [0, 0, 1, 1], [], []>} : vector<16x512xbf16>, vector<512x128xbf16>, vector<16x128xf32> -> vector<16x128xf32>
    %c0_9 = arith.constant 0 : index
    %c0_10 = arith.constant 0 : index
    %11 = vector.load %arg5[%c0_9, %c0_10] : memref<1x128xf32, #tpu.memory_space<vmem>>, vector<1x128xf32>
    %12 = vector.broadcast %11 : vector<1x128xf32> to vector<16x128xf32>
    %13 = arith.addf %10, %12 : vector<16x128xf32>
    %cst_11 = arith.constant 0.000000e+00 : f32
    %14 = vector.broadcast %cst_11 : f32 to vector<16x128xf32>
    %15 = arith.maximumf %13, %14 : vector<16x128xf32>
    %16 = arith.truncf %15 : vector<16x128xf32> to vector<16x128xbf16>
    %c0_12 = arith.constant 0 : index
    %c0_13 = arith.constant 0 : index
    %17 = vector.load %arg6[%c0_12, %c0_13] : memref<128x128xbf16, #tpu.memory_space<vmem>>, vector<128x128xbf16>
    %cst_14 = arith.constant dense<0.000000e+00> : vector<16x128xf32>
    %18 = tpu.matmul %16, %17, %cst_14 {dimension_numbers = #tpu.dot_dimension_numbers<[1], [0], [0], [1], [0, 0, 1, 1], [], []>} : vector<16x128xbf16>, vector<128x128xbf16>, vector<16x128xf32> -> vector<16x128xf32>
    %c0_15 = arith.constant 0 : index
    %c0_16 = arith.constant 0 : index
    %19 = vector.load %arg7[%c0_15, %c0_16] : memref<1x128xf32, #tpu.memory_space<vmem>>, vector<1x128xf32>
    %20 = vector.broadcast %19 : vector<1x128xf32> to vector<16x128xf32>
    %21 = arith.addf %18, %20 : vector<16x128xf32>
    %22 = arith.truncf %21 : vector<16x128xf32> to vector<16x128xbf16>
    %c0_17 = arith.constant 0 : index
    %c0_18 = arith.constant 0 : index
    %23 = vector.load %arg8[%c0_17, %c0_18] : memref<16x128xbf16, #tpu.memory_space<vmem>>, vector<16x128xbf16>
    tpu.vector_store %arg8[%c0_17, %c0_18], %22 {strides = array<i32>} : memref<16x128xbf16, #tpu.memory_space<vmem>>, vector<16x128xbf16>,
    return
  }
  func.func @transform_0(%arg0: i32) -> (i32, i32) {
    %c0_i32 = arith.constant 0 : i32
    %c0_i32_0 = arith.constant 0 : i32
    return %arg0, %c0_i32 : i32, i32
  }
  func.func @transform_1(%arg0: i32) -> (i32, i32) {
    %c0_i32 = arith.constant 0 : i32
    %c0_i32_0 = arith.constant 0 : i32
    %c0_i32_1 = arith.constant 0 : i32
    return %c0_i32, %c0_i32_0 : i32, i32
  }
  func.func @transform_2(%arg0: i32) -> (i32, i32) {
    %c0_i32 = arith.constant 0 : i32
    %c0_i32_0 = arith.constant 0 : i32
    %c0_i32_1 = arith.constant 0 : i32
    return %c0_i32, %c0_i32_0 : i32, i32
  }
  func.func @transform_3(%arg0: i32) -> (i32, i32) {
    %c0_i32 = arith.constant 0 : i32
    %c0_i32_0 = arith.constant 0 : i32
    %c0_i32_1 = arith.constant 0 : i32
    return %c0_i32, %c0_i32_0 : i32, i32
  }
  func.func @transform_4(%arg0: i32) -> (i32, i32) {
    %c0_i32 = arith.constant 0 : i32
    %c0_i32_0 = arith.constant 0 : i32
    %c0_i32_1 = arith.constant 0 : i32
    return %c0_i32, %c0_i32_0 : i32, i32
  }
  func.func @transform_5(%arg0: i32) -> (i32, i32) {
    %c0_i32 = arith.constant 0 : i32
    %c0_i32_0 = arith.constant 0 : i32
    %c0_i32_1 = arith.constant 0 : i32
    return %c0_i32, %c0_i32_0 : i32, i32
  }
  func.func @transform_6(%arg0: i32) -> (i32, i32) {
    %c0_i32 = arith.constant 0 : i32
    %c0_i32_0 = arith.constant 0 : i32
    %c0_i32_1 = arith.constant 0 : i32
    return %c0_i32, %c0_i32_0 : i32, i32
  }
  func.func @transform_7(%arg0: i32) -> (i32, i32) {
    %c0_i32 = arith.constant 0 : i32
    %c0_i32_0 = arith.constant 0 : i32
    return %arg0, %c0_i32 : i32, i32
  }
}

</mosaic_0001>

<bundles_post_ra>
// kernel: cnn_decoder_forward.1
= control target key start
LH: loop header
LB: loop body
LE: loop exit
PB: predicated region body
PF: predicated region fallthrough
CT: control target
= control target key end

     0   :  { %12 = vsyncpa [#allocation3], 0  ;;  %s1547_s0 = inlined_call_operand.vmem [shape: bf16[16,256], index: 0, kind: input, shape index: {}]   ;;  %s1548_s1 = inlined_call_operand.hbm [shape: bf16[256,512], index: 1, kind: input, shape index: {}]   ;;  %s1549_s2 = inlined_call_operand.vmem [shape: f32[1,512], index: 2, kind: input, shape index: {}]   ;;  %s1550_s3 = inlined_call_operand.hbm [shape: bf16[512,128], index: 3, kind: input, shape index: {}]   ;;  %s1551_s4 = inlined_call_operand.vmem [shape: f32[1,128], index: 4, kind: input, shape index: {}]   ;;  %s1552_s5 = inlined_call_operand.hbm [shape: bf16[128,128], index: 5, kind: input, shape index: {}]   ;;  %s1553_s6 = inlined_call_operand.vmem [shape: f32[1,128], index: 6, kind: input, shape index: {}]   ;;  %s1554_s7 = inlined_call_operand.vmem [shape: bf16[16,128], index: 7, kind: output, shape index: {}]  }
   0x1   :  { %13 = vsyncpa [#allocation5], 0  ;;  %s1462_s24 = smov [#allocation4]  }
   0x2   :  { %s35_s25 = sshll.u32 %s1462_s24, 4  ;;  %s36_s25 = int_to_ptr.vmem [resolvable:$true] %s35_s25 }
   0x3   :  { %s1406_s26 = scalar_lea.vmem %s36_s25, 4096  ;;  %p1411_p1 = scmp.lt.s32.totalorder %s36_s25, %s36_s25 }
   0x4   :  { %p1407_p0 = scmp.ne.s32.totalorder %s36_s25, %s1406_s26  ;;  %p1412_p2 = scmp.lt.s32.totalorder %s1406_s26, %s1406_s26 }
   0x6   :  { %p1413_p3 = por %p1412_p2, %p1411_p1 }
   0x8   :  { %p1414_p4 = pnand %p1413_p3, %p1407_p0 }
   0xa   :  { %1417 = shalt.err (!%p1414_p4)
}
   0xb   :  { %s1463_s27 = smov 64   ;;  %s1464_s28 = smov 4  }
   0xc   :  { %41 = dma.hbm_to_vmem [thread:$0]  %s1550_s3, 4096, %s36_s25, [#allocation5], %s1463_s27, %s1463_s27, %s1464_s28  }
   0xd   :  { %s1465_s8 = smov [#allocation2]  }
   0xe   :  { %s21_s9 = sshll.u32 %s1465_s8, 4  ;;  %s22_s9 = int_to_ptr.vmem [resolvable:$true] %s21_s9 }
   0xf   :  { %s1426_s10 = scalar_lea.vmem %s22_s9, 8192  ;;  %p1431_p6 = scmp.lt.s32.totalorder %s22_s9, %s22_s9 }
  0x10   :  { %p1427_p5 = scmp.ne.s32.totalorder %s22_s9, %s1426_s10  ;;  %p1432_p7 = scmp.lt.s32.totalorder %s1426_s10, %s1426_s10 }
  0x12   :  { %p1433_p8 = por %p1432_p7, %p1431_p6 }
  0x14   :  { %p1434_p9 = pnand %p1433_p8, %p1427_p5 }
  0x16   :  { %1437 = shalt.err (!%p1434_p9)
}
  0x17   :  { %s1466_s11 = smov 256   ;;  %s1467_s12 = smov 16  }
  0x18   :  { %27 = dma.hbm_to_vmem [thread:$0]  %s1548_s1, 8192, %s22_s9, [#allocation3], %s1466_s11, %s1466_s11, %s1467_s12  }
  0x19   :  { %s1468_s15 = smov [#allocation6]  }
  0x1a   :  { %s49_s16 = sshll.u32 %s1468_s15, 4  ;;  %s50_s16 = int_to_ptr.vmem [resolvable:$true] %s49_s16 }
  0x1b   :  { %s1446_s3 = scalar_lea.vmem %s50_s16, 1024  ;;  %p1451_p11 = scmp.lt.s32.totalorder %s50_s16, %s50_s16 }
  0x1c   :  { %p1447_p10 = scmp.ne.s32.totalorder %s50_s16, %s1446_s3  ;;  %p1452_p12 = scmp.lt.s32.totalorder %s1446_s3, %s1446_s3 }
  0x1e   :  { %p1453_p13 = por %p1452_p12, %p1451_p11 }
  0x20   :  { %p1454_p0 = pnand %p1453_p13, %p1447_p10 }
  0x22   :  { %1457 = shalt.err (!%p1454_p0)
}
  0x23   :  { %55 = dma.hbm_to_vmem [thread:$0]  %s1552_s5, 1024, %s50_s16, [#allocation5], %s1463_s27, %s1463_s27, %s1464_s28  }
  0x24   :  { %1458 = dma.done.wait [#allocation3], 8192  }
  0x25   :  { %1459 = vsyncadd [#allocation3], 4294959104 }
  0x26   :  { %1460 = dma.done.wait [#allocation5], 5120  }
  0x27   :  { %1461 = vsyncadd [#allocation5], 4294962176  ;;  %v1259_v0 = vld [vmem:[#allocation2 + $0xe4] ss:$16 sps:$4 sm:$0xff]   ;;  %v1261_v1 = vld [vmem:[#allocation2 + $0xec] ss:$16 sps:$4 sm:$0xff]  }
  0x28   :  { %486 = vmatprep.subr.bf16.mxu0 %v1259_v0  ;;  %v1263_v2 = vld [vmem:[#allocation2 + $0xe0] ss:$16 sps:$4 sm:$0xff]   ;;  %v1264_v3 = vld [vmem:[#allocation2 + $0xe8] ss:$16 sps:$4 sm:$0xff]   ;;  %529 = vmatprep.subr.bf16.mxu1 %v1261_v1  ;;  %v1265_v4 = vld [vmem:[#allocation2 + $0xc4] ss:$16 sps:$4 sm:$0xff]  }
  0x29   :  { %487 = vmatpush1.bf16.msra.mxu0 %v1263_v2  ;;  %530 = vmatpush1.bf16.msra.mxu1 %v1264_v3  ;;  %v1267_v5 = vld [vmem:[#allocation2 + $0xcc] ss:$16 sps:$4 sm:$0xff]   ;;  %v1269_v6 = vld [vmem:[#allocation2 + $0xc0] ss:$16 sps:$4 sm:$0xff]   ;;  %v1270_v7 = vld [vmem:[#allocation2 + $0xc8] ss:$16 sps:$4 sm:$0xff]  }
  0x2a   :  { %488 = vmatprep.subr.bf16.mxu0 %v1265_v4  ;;  %531 = vmatprep.subr.bf16.mxu1 %v1267_v5  ;;  %v1271_v8 = vld [vmem:[#allocation2 + $0xa4] ss:$16 sps:$4 sm:$0xff]   ;;  %v1273_v9 = vld [vmem:[#allocation2 + $0xac] ss:$16 sps:$4 sm:$0xff]   ;;  %v1275_v10 = vld [vmem:[#allocation2 + $0xa0] ss:$16 sps:$4 sm:$0xff]  }
  0x2b   :  { %v1276_v11 = vld [vmem:[#allocation2 + $0xa8] ss:$16 sps:$4 sm:$0xff]   ;;  %v1277_v12 = vld [vmem:[#allocation2 + $0x84] ss:$16 sps:$4 sm:$0xff]   ;;  %v1279_v13 = vld [vmem:[#allocation2 + $0x8c] ss:$16 sps:$4 sm:$0xff]  }
  0x2c   :  { %v1281_v14 = vld [vmem:[#allocation2 + $0x80] ss:$16 sps:$4 sm:$0xff]   ;;  %v1282_v15 = vld [vmem:[#allocation2 + $0x88] ss:$16 sps:$4 sm:$0xff]   ;;  %v1283_v16 = vld [vmem:[#allocation2 + $0x64] ss:$16 sps:$4 sm:$0xff]  }
  0x2d   :  { %489 = vmatpush1.bf16.msra.mxu0 %v1269_v6  ;;  %532 = vmatpush1.bf16.msra.mxu1 %v1270_v7  ;;  %v1285_v17 = vld [vmem:[#allocation2 + $0x6c] ss:$16 sps:$4 sm:$0xff]   ;;  %v1287_v18 = vld [vmem:[#allocation2 + $0x60] ss:$16 sps:$4 sm:$0xff]   ;;  %v1288_v19 = vld [vmem:[#allocation2 + $0x68] ss:$16 sps:$4 sm:$0xff]  }
  0x2e   :  { %490 = vmatprep.subr.bf16.mxu0 %v1271_v8  ;;  %533 = vmatprep.subr.bf16.mxu1 %v1273_v9  ;;  %v1289_v20 = vld [vmem:[#allocation2 + $0x44] ss:$16 sps:$4 sm:$0xff]   ;;  %v1291_v21 = vld [vmem:[#allocation2 + $0x4c] ss:$16 sps:$4 sm:$0xff]   ;;  %v1293_v22 = vld [vmem:[#allocation2 + $0x40] ss:$16 sps:$4 sm:$0xff]  }
  0x2f   :  { %v1294_v23 = vld [vmem:[#allocation2 + $0x48] ss:$16 sps:$4 sm:$0xff]   ;;  %v1295_v24 = vld [vmem:[#allocation2 + $0x24] ss:$16 sps:$4 sm:$0xff]   ;;  %v1297_v25 = vld [vmem:[#allocation2 + $0x2c] ss:$16 sps:$4 sm:$0xff]  }
  0x30   :  { %v1299_v26 = vld [vmem:[#allocation2 + $0x20] ss:$16 sps:$4 sm:$0xff]   ;;  %v1300_v27 = vld [vmem:[#allocation2 + $0x28] ss:$16 sps:$4 sm:$0xff]   ;;  %v1301_v28 = vld [vmem:[#allocation2 + $0x4] ss:$16 sps:$4 sm:$0xff]  }
  0x31   :  { %491 = vmatpush1.bf16.msra.mxu0 %v1275_v10  ;;  %534 = vmatpush1.bf16.msra.mxu1 %v1276_v11  ;;  %v1303_v29 = vld [vmem:[#allocation2 + $0xc] ss:$16 sps:$4 sm:$0xff]   ;;  %v1305_v30 = vld [vmem:[#allocation2] ss:$16 sps:$4 sm:$0xff]   ;;  %v1306_v31 = vld [vmem:[#allocation2 + $0x8] ss:$16 sps:$4 sm:$0xff]  }
  0x32   :  { %492 = vmatprep.subr.bf16.mxu0 %v1277_v12  ;;  %535 = vmatprep.subr.bf16.mxu1 %v1279_v13  ;;  %v1307_v32 = vld [vmem:[#allocation2 + $0x1e4] ss:$16 sps:$4 sm:$0xff]   ;;  %v1309_v33 = vld [vmem:[#allocation2 + $0x1ec] ss:$16 sps:$4 sm:$0xff]   ;;  %v1311_v34 = vld [vmem:[#allocation2 + $0x1e0] ss:$16 sps:$4 sm:$0xff]  }
  0x33   :  { %v1312_v35 = vld [vmem:[#allocation2 + $0x1e8] ss:$16 sps:$4 sm:$0xff]   ;;  %v1313_v36 = vld [vmem:[#allocation2 + $0x1c4] ss:$16 sps:$4 sm:$0xff]   ;;  %v1315_v37 = vld [vmem:[#allocation2 + $0x1cc] ss:$16 sps:$4 sm:$0xff]  }
  0x34   :  { %v1317_v38 = vld [vmem:[#allocation2 + $0x1c0] ss:$16 sps:$4 sm:$0xff]   ;;  %v1318_v39 = vld [vmem:[#allocation2 + $0x1c8] ss:$16 sps:$4 sm:$0xff]   ;;  %v1319_v40 = vld [vmem:[#allocation2 + $0x1a4] ss:$16 sps:$4 sm:$0xff]  }
  0x35   :  { %493 = vmatpush1.bf16.msra.mxu0 %v1281_v14  ;;  %536 = vmatpush1.bf16.msra.mxu1 %v1282_v15  ;;  %v1321_v41 = vld [vmem:[#allocation2 + $0x1ac] ss:$16 sps:$4 sm:$0xff]   ;;  %v1323_v42 = vld [vmem:[#allocation2 + $0x1a0] ss:$16 sps:$4 sm:$0xff]   ;;  %v1324_v43 = vld [vmem:[#allocation2 + $0x1a8] ss:$16 sps:$4 sm:$0xff]  }
  0x36   :  { %494 = vmatprep.subr.bf16.mxu0 %v1283_v16  ;;  %537 = vmatprep.subr.bf16.mxu1 %v1285_v17  ;;  %v1325_v44 = vld [vmem:[#allocation2 + $0x184] ss:$16 sps:$4 sm:$0xff]   ;;  %v1327_v45 = vld [vmem:[#allocation2 + $0x18c] ss:$16 sps:$4 sm:$0xff]   ;;  %v1329_v46 = vld [vmem:[#allocation2 + $0x180] ss:$16 sps:$4 sm:$0xff]  }
  0x37   :  { %v1330_v47 = vld [vmem:[#allocation2 + $0x188] ss:$16 sps:$4 sm:$0xff]   ;;  %v1357_v48 = vld [vmem:[%s1547_s0 + $0x4] ss:$8 sps:$4 sm:$0xff]   ;;  %v1335_v51 = vld [vmem:[#allocation2 + $0x160] ss:$16 sps:$4 sm:$0xff]  }
  0x38   :  { %v1331_v49 = vld [vmem:[#allocation2 + $0x164] ss:$16 sps:$4 sm:$0xff]   ;;  %v1333_v50 = vld [vmem:[#allocation2 + $0x16c] ss:$16 sps:$4 sm:$0xff]   ;;  %518 = vmatprep.mubr.bf16.mxu0 %v1357_v48  ;;  %561 = vmatprep.mubr.bf16.mxu1 %v1357_v48  ;;  %v1336_v52 = vld [vmem:[#allocation2 + $0x168] ss:$16 sps:$4 sm:$0xff]  }
  0x39   :  { %495 = vmatpush1.bf16.msra.mxu0 %v1287_v18  ;;  %538 = vmatpush1.bf16.msra.mxu1 %v1288_v19  ;;  %v1337_v53 = vld [vmem:[#allocation2 + $0x144] ss:$16 sps:$4 sm:$0xff]   ;;  %v1339_v54 = vld [vmem:[#allocation2 + $0x14c] ss:$16 sps:$4 sm:$0xff]   ;;  %v1341_v55 = vld [vmem:[#allocation2 + $0x140] ss:$16 sps:$4 sm:$0xff]  }
  0x3a   :  { %496 = vmatprep.subr.bf16.mxu0 %v1289_v20  ;;  %539 = vmatprep.subr.bf16.mxu1 %v1291_v21  ;;  %v1342_v56 = vld [vmem:[#allocation2 + $0x148] ss:$16 sps:$4 sm:$0xff]   ;;  %v1343_v57 = vld [vmem:[#allocation2 + $0x124] ss:$16 sps:$4 sm:$0xff]   ;;  %v1345_v58 = vld [vmem:[#allocation2 + $0x12c] ss:$16 sps:$4 sm:$0xff]  }
  0x3b   :  { %v1347_v59 = vld [vmem:[#allocation2 + $0x120] ss:$16 sps:$4 sm:$0xff]   ;;  %v1348_v60 = vld [vmem:[#allocation2 + $0x128] ss:$16 sps:$4 sm:$0xff]   ;;  %v1349_v61 = vld [vmem:[#allocation2 + $0x104] ss:$16 sps:$4 sm:$0xff]  }
  0x3c   :  { %v1351_v62 = vld [vmem:[#allocation2 + $0x10c] ss:$16 sps:$4 sm:$0xff]   ;;  %v1353_v63 = vld [vmem:[#allocation2 + $0x100] ss:$16 sps:$4 sm:$0xff]   ;;  %v1354_v0 = vld [vmem:[#allocation2 + $0x108] ss:$16 sps:$4 sm:$0xff]  }
  0x3d   :  { %497 = vmatpush1.bf16.msra.mxu0 %v1293_v22  ;;  %540 = vmatpush1.bf16.msra.mxu1 %v1294_v23  ;;  %v1358_v1 = vld [vmem:[#allocation4 + $0x78] sm:$0xff]   ;;  %v1355_v2 = vld [vmem:[%s1547_s0] ss:$8 sps:$4 sm:$0xff]   ;;  %v1362_v6 = vld [vmem:[#allocation4 + $0x70] sm:$0xff]   ;;  %vm1470_vm0 = vmmov 0  }
  0x3e   :  { %498 = vmatprep.subr.bf16.mxu0 %v1295_v24  ;;  %541 = vmatprep.subr.bf16.mxu1 %v1297_v25  ;;  %v1359_v3 = vld [vmem:[#allocation4 + $0xf8] sm:$0xff]   ;;  %v1363_v7 = vld [vmem:[#allocation4 + $0xf0] sm:$0xff]   ;;  %v1366_v10 = vld [vmem:[#allocation4 + $0x68] sm:$0xff]  }
  0x3f   :  { %v1360_v4 = vld [vmem:[#allocation4 + $0x38] sm:$0xff]   ;;  %v1364_v8 = vld [vmem:[#allocation4 + $0x30] sm:$0xff]   ;;  %v1367_v11 = vld [vmem:[#allocation4 + $0xe8] sm:$0xff]  }
  0x40   :  { %v1361_v5 = vld [vmem:[#allocation4 + $0xb8] sm:$0xff]   ;;  %v1365_v9 = vld [vmem:[#allocation4 + $0xb0] sm:$0xff]   ;;  %v1368_v12 = vld [vmem:[#allocation4 + $0x28] sm:$0xff]  }
  0x41   :  { %499 = vmatpush1.bf16.msra.mxu0 %v1299_v26  ;;  %542 = vmatpush1.bf16.msra.mxu1 %v1300_v27  ;;  %v1369_v13 = vld [vmem:[#allocation4 + $0xa8] sm:$0xff]   ;;  %v1370_v14 = vld [vmem:[#allocation4 + $0x60] sm:$0xff]   ;;  %v1374_v18 = vld [vmem:[#allocation4 + $0x58] sm:$0xff]  }
  0x42   :  { %500 = vmatprep.subr.bf16.mxu0 %v1301_v28  ;;  %543 = vmatprep.subr.bf16.mxu1 %v1303_v29  ;;  %v1371_v15 = vld [vmem:[#allocation4 + $0xe0] sm:$0xff]   ;;  %v1375_v19 = vld [vmem:[#allocation4 + $0xd8] sm:$0xff]   ;;  %v1378_v22 = vld [vmem:[#allocation4 + $0x50] sm:$0xff]  }
  0x43   :  { %v1372_v16 = vld [vmem:[#allocation4 + $0x20] sm:$0xff]   ;;  %v1376_v20 = vld [vmem:[#allocation4 + $0x18] sm:$0xff]   ;;  %v1379_v23 = vld [vmem:[#allocation4 + $0xd0] sm:$0xff]  }
  0x44   :  { %v1373_v17 = vld [vmem:[#allocation4 + $0xa0] sm:$0xff]   ;;  %v1377_v21 = vld [vmem:[#allocation4 + $0x98] sm:$0xff]   ;;  %v1380_v24 = vld [vmem:[#allocation4 + $0x10] sm:$0xff]  }
  0x45   :  { %501 = vmatpush1.bf16.msra.mxu0 %v1305_v30  ;;  %544 = vmatpush1.bf16.msra.mxu1 %v1306_v31  ;;  %v1381_v25 = vld [vmem:[#allocation4 + $0x90] sm:$0xff]   ;;  %v1382_v26 = vld [vmem:[#allocation4 + $0x48] sm:$0xff]   ;;  %v1386_v30 = vld [vmem:[#allocation4 + $0x40] sm:$0xff]  }
  0x46   :  { %502 = vmatprep.subr.bf16.mxu0 %v1307_v32  ;;  %545 = vmatprep.subr.bf16.mxu1 %v1309_v33  ;;  %v1383_v27 = vld [vmem:[#allocation4 + $0xc8] sm:$0xff]   ;;  %v1387_v31 = vld [vmem:[#allocation4 + $0xc0] sm:$0xff]  }
  0x47   :  { %v1384_v28 = vld [vmem:[#allocation4 + $0x8] sm:$0xff]   ;;  %v1388_v32 = vld [vmem:[#allocation4] sm:$0xff]  }
  0x48   :  { %v1385_v29 = vld [vmem:[#allocation4 + $0x88] sm:$0xff]   ;;  %v1389_v33 = vld [vmem:[#allocation4 + $0x80] sm:$0xff]  }
  0x49   :  { %503 = vmatpush2.bf16.msra.mxu0 %v1311_v34  ;;  %546 = vmatpush2.bf16.msra.mxu1 %v1312_v35  ;;  %v1469_v34 = vmov 0.0   ;;  %v136_v35 = vlaneseq }
  0x4a   :  { %504 = vmatprep.subr.bf16.mxu0 %v1313_v36  ;;  %547 = vmatprep.subr.bf16.mxu1 %v1315_v37 }
  0x4b   :  { %v137_v36 = vshrl.u32 %v136_v35, 7 }
  0x4d   :  { %505 = vmatpush2.bf16.msra.mxu0 %v1317_v38  ;;  %548 = vmatpush2.bf16.msra.mxu1 %v1318_v39  ;;  %v142_v37 = vsub.s32 1, %v137_v36  ;;  %v150_v38 = vsub.s32 3, %v137_v36  ;;  %v138_v39 = vsub.s32 0, %v137_v36 }
  0x4e   :  { %506 = vmatprep.subr.bf16.mxu0 %v1319_v40  ;;  %549 = vmatprep.subr.bf16.mxu1 %v1321_v41  ;;  %v146_v40 = vsub.s32 2, %v137_v36  ;;  %v134_v41 = vld [vmem:[%s1549_s2] sm:$0xf] }
  0x51   :  { %507 = vmatpush2.bf16.msra.mxu0 %v1323_v42  ;;  %550 = vmatpush2.bf16.msra.mxu1 %v1324_v43 }
  0x52   :  { %508 = vmatprep.subr.bf16.mxu0 %v1325_v44  ;;  %551 = vmatprep.subr.bf16.mxu1 %v1327_v45  ;;  %v143_v44 = vrot.slane %v134_v41, %v142_v37  ;;  %v151_v45 = vrot.slane %v134_v41, %v150_v38 }
  0x55   :  { %509 = vmatpush2.bf16.msra.mxu0 %v1329_v46  ;;  %552 = vmatpush2.bf16.msra.mxu1 %v1330_v47  ;;  %v139_v46 = vrot.slane %v134_v41, %v138_v39  ;;  %v147_v47 = vrot.slane %v134_v41, %v146_v40  ;;  %v1159_v39 = vld [vmem:[%s1553_s6] ss:$0 sm:$0xff] }
  0x56   :  { %510 = vmatprep.subr.bf16.mxu0 %v1331_v49  ;;  %553 = vmatprep.subr.bf16.mxu1 %v1333_v50 }
  0x59   :  { %511 = vmatpush2.bf16.msra.mxu0 %v1335_v51  ;;  %554 = vmatpush2.bf16.msra.mxu1 %v1336_v52 }
  0x5a   :  { %512 = vmatprep.subr.bf16.mxu0 %v1337_v53  ;;  %555 = vmatprep.subr.bf16.mxu1 %v1339_v54 }
  0x5d   :  { %513 = vmatpush2.bf16.msra.mxu0 %v1341_v55  ;;  %556 = vmatpush2.bf16.msra.mxu1 %v1342_v56 }
  0x5e   :  { %514 = vmatprep.subr.bf16.mxu0 %v1343_v57  ;;  %557 = vmatprep.subr.bf16.mxu1 %v1345_v58 }
  0x61   :  { %515 = vmatpush2.bf16.msra.mxu0 %v1347_v59  ;;  %558 = vmatpush2.bf16.msra.mxu1 %v1348_v60 }
  0x62   :  { %516 = vmatprep.subr.bf16.mxu0 %v1349_v61  ;;  %559 = vmatprep.subr.bf16.mxu1 %v1351_v62 }
  0x65   :  { %517 = vmatpush2.bf16.msra.mxu0 %v1353_v63  ;;  %560 = vmatpush2.bf16.msra.mxu1 %v1354_v0 }
  0x66   :  { %1177 = vmatprep.subr.bf16.mxu0 %v1358_v1  ;;  %1199 = vmatprep.subr.bf16.mxu1 %v1359_v3 }
  0x68   :  { %519 = vmatmul.mubr.bf16.vlgmr.msra.gmra.mxu0 %v1355_v2  ;;  %562 = vmatmul.mubr.bf16.vlgmr.msra.gmra.mxu1 %v1355_v2 }
  0x69   :  { %1178 = vmatpush3.bf16.msra.mxu0 %v1360_v4  ;;  %1200 = vmatpush3.bf16.msra.mxu1 %v1361_v5 }
  0x6a   :  { %1179 = vmatprep.subr.bf16.mxu0 %v1362_v6  ;;  %1201 = vmatprep.subr.bf16.mxu1 %v1363_v7 }
  0x6d   :  { %1180 = vmatpush3.bf16.msra.mxu0 %v1364_v8  ;;  %1202 = vmatpush3.bf16.msra.mxu1 %v1365_v9  ;;  %v1390_v8 = vld [vmem:[#allocation6 + $0x38] sm:$0xff]  }
  0x6e   :  { %1181 = vmatprep.subr.bf16.mxu0 %v1366_v10  ;;  %1203 = vmatprep.subr.bf16.mxu1 %v1367_v11  ;;  %v1391_v11 = vld [vmem:[#allocation6 + $0x30] sm:$0xff]  }
  0x71   :  { %1182 = vmatpush3.bf16.msra.mxu0 %v1368_v12  ;;  %1204 = vmatpush3.bf16.msra.mxu1 %v1369_v13  ;;  %v1392_v12 = vld [vmem:[#allocation6 + $0x28] sm:$0xff]   ;;  %v1393_v13 = vld [vmem:[#allocation6 + $0x20] sm:$0xff]  }
  0x72   :  { %1183 = vmatprep.subr.bf16.mxu0 %v1370_v14  ;;  %1205 = vmatprep.subr.bf16.mxu1 %v1371_v15  ;;  %v1394_v14 = vld [vmem:[#allocation6 + $0x18] sm:$0xff]   ;;  %v1395_v15 = vld [vmem:[#allocation6 + $0x10] sm:$0xff]  }
  0x75   :  { %1184 = vmatpush3.bf16.msra.mxu0 %v1372_v16  ;;  %1206 = vmatpush3.bf16.msra.mxu1 %v1373_v17  ;;  %v1396_v16 = vld [vmem:[#allocation6 + $0x8] sm:$0xff]   ;;  %v1397_v17 = vld [vmem:[#allocation6] sm:$0xff]  }
  0x76   :  { %1185 = vmatprep.subr.bf16.mxu0 %v1374_v18  ;;  %1207 = vmatprep.subr.bf16.mxu1 %v1375_v19 }
  0x79   :  { %1186 = vmatpush3.bf16.msra.mxu0 %v1376_v20  ;;  %1208 = vmatpush3.bf16.msra.mxu1 %v1377_v21  ;;  %v1126_v20 = vld [vmem:[%s1551_s4] ss:$0 sm:$0xff] }
  0x7a   :  { %1187 = vmatprep.subr.bf16.mxu0 %v1378_v22  ;;  %1209 = vmatprep.subr.bf16.mxu1 %v1379_v23 }
  0x7d   :  { %1188 = vmatpush3.bf16.msra.mxu0 %v1380_v24  ;;  %1210 = vmatpush3.bf16.msra.mxu1 %v1381_v25 }
  0x7e   :  { %1189 = vmatprep.subr.bf16.mxu0 %v1382_v26  ;;  %1211 = vmatprep.subr.bf16.mxu1 %v1383_v27 }
  0x81   :  { %1190 = vmatpush3.bf16.msra.mxu0 %v1384_v28  ;;  %1212 = vmatpush3.bf16.msra.mxu1 %v1385_v29 }
  0x82   :  { %1191 = vmatprep.subr.bf16.mxu0 %v1386_v30  ;;  %1213 = vmatprep.subr.bf16.mxu1 %v1387_v31 }
  0x85   :  { %1192 = vmatpush3.bf16.msra.mxu0 %v1388_v32  ;;  %1214 = vmatpush3.bf16.msra.mxu1 %v1389_v33 }
  0x86   :  { %1230 = vmatprep.subr.bf16.mxu0 %v1469_v34 }
 0x128   :  { %v520_v42 = vpop.f32.mrf.mxu0  ;;  %v563_v43 = vpop.f32.mrf.mxu1 }
 0x129   :  { %v521_v56 = vadd.f32 %v520_v42, %v139_v46  ;;  %v564_v57 = vadd.f32 %v563_v43, %v147_v47 }
 0x12a   :  { %v522_v48 = vpop.f32.mrf.mxu0  ;;  %v565_v49 = vpop.f32.mrf.mxu1 }
 0x12b   :  { %v523_v52 = vadd.f32 %v522_v48, %v143_v44  ;;  %v566_v53 = vadd.f32 %v565_v49, %v151_v45  ;;  %v572_v4 = vmax.f32 %v521_v56, 0.0  ;;  %v574_v5 = vmax.f32 %v564_v57, 0.0 }
 0x12c   :  { %v524_v50 = vpop.f32.mrf.mxu0  ;;  %v567_v51 = vpop.f32.mrf.mxu1 }
 0x12d   :  { %v525_v54 = vadd.f32 %v524_v50, %v139_v46  ;;  %v568_v55 = vadd.f32 %v567_v51, %v147_v47  ;;  %v573_v0 = vmax.f32 %v523_v52, 0.0  ;;  %v575_v1 = vmax.f32 %v566_v53, 0.0 }
 0x12e   :  { %v526_v58 = vpop.f32.mrf.mxu0  ;;  %v569_v59 = vpop.f32.mrf.mxu1 }
 0x12f   :  { %v527_v60 = vadd.f32 %v526_v58, %v143_v44  ;;  %v570_v61 = vadd.f32 %v569_v59, %v151_v45  ;;  %v576_v62 = vmax.f32 %v525_v54, 0.0  ;;  %v578_v63 = vmax.f32 %v568_v55, 0.0 }
 0x131   :  { %v577_v2 = vmax.f32 %v527_v60, 0.0  ;;  %v579_v3 = vmax.f32 %v570_v61, 0.0  ;;  %v580_v9 = vpack.c.bf16 %v576_v62, %v572_v4  ;;  %v582_v10 = vpack.c.bf16 %v578_v63, %v574_v5 }
 0x133   :  { %v581_v6 = vpack.c.bf16 %v577_v2, %v573_v0  ;;  %v583_v7 = vpack.c.bf16 %v579_v3, %v575_v1 }
 0x135   :  { %879 = vmatprep.mubr.bf16.mxu0 %v581_v6  ;;  %920 = vmatprep.mubr.bf16.mxu1 %v583_v7 }
 0x136   :  { %880 = vmatmul.mubr.bf16.vlgmr.msra.gmra.mxu0 %v580_v9  ;;  %921 = vmatmul.mubr.bf16.vlgmr.msra.gmra.mxu1 %v582_v10 }
 0x137   :  { %1231 = vmatpush3.bf16.msra.mxu0 %v1390_v8  ;;  %1246 = vmatprep.mubr.msk.bf16.mxu0 %vm1470_vm0, %v1469_v34 }
 0x138   :  { %1232 = vmatprep.subr.bf16.mxu0 %v1469_v34 }
 0x13b   :  { %1233 = vmatpush3.bf16.msra.mxu0 %v1391_v11 }
 0x13c   :  { %1234 = vmatprep.subr.bf16.mxu0 %v1469_v34 }
 0x13f   :  { %1235 = vmatpush3.bf16.msra.mxu0 %v1392_v12 }
 0x140   :  { %1236 = vmatprep.subr.bf16.mxu0 %v1469_v34 }
 0x143   :  { %1237 = vmatpush3.bf16.msra.mxu0 %v1393_v13 }
 0x144   :  { %1238 = vmatprep.subr.bf16.mxu0 %v1469_v34 }
 0x147   :  { %1239 = vmatpush3.bf16.msra.mxu0 %v1394_v14 }
 0x148   :  { %1240 = vmatprep.subr.bf16.mxu0 %v1469_v34 }
 0x14b   :  { %1241 = vmatpush3.bf16.msra.mxu0 %v1395_v15 }
 0x14c   :  { %1242 = vmatprep.subr.bf16.mxu0 %v1469_v34 }
 0x14f   :  { %1243 = vmatpush3.bf16.msra.mxu0 %v1396_v16 }
 0x150   :  { %1244 = vmatprep.subr.bf16.mxu0 %v1469_v34 }
 0x153   :  { %1245 = vmatpush3.bf16.msra.mxu0 %v1397_v17 }
 0x1f6   :  { %v1193_v18 = vpop.f32.mrf.mxu0  ;;  %v1215_v19 = vpop.f32.mrf.mxu1 }
 0x1f8   :  { %v1194_v21 = vpop.f32.mrf.mxu0  ;;  %v1216_v22 = vpop.f32.mrf.mxu1 }
 0x1f9   :  { %v1195_v23 = vadd.f32 %v1194_v21, %v1193_v18  ;;  %v1217_v29 = vadd.f32 %v1216_v22, %v1215_v19 }
 0x1fa   :  { %v1196_v24 = vpop.f32.mrf.mxu0  ;;  %v1218_v25 = vpop.f32.mrf.mxu1 }
 0x1fb   :  { %v882_v26 = vadd.f32 %v1195_v23, %v1126_v20 }
 0x1fc   :  { %v1197_v27 = vpop.f32.mrf.mxu0  ;;  %v1219_v28 = vpop.f32.mrf.mxu1 }
 0x1fd   :  { %v1198_v30 = vadd.f32 %v1197_v27, %v1196_v24  ;;  %v923_v31 = vadd.f32 %v1217_v29, %v882_v26  ;;  %v1220_v33 = vadd.f32 %v1219_v28, %v1218_v25 }
 0x1ff   :  { %v885_v32 = vadd.f32 %v1198_v30, %v1126_v20  ;;  %v929_v35 = vmax.f32 %v923_v31, 0.0 }
 0x201   :  { %v926_v34 = vadd.f32 %v1220_v33, %v885_v32 }
 0x203   :  { %v930_v36 = vmax.f32 %v926_v34, 0.0 }
 0x205   :  { %v931_v37 = vpack.c.bf16 %v930_v36, %v929_v35 }
 0x207   :  { %1247 = vmatmul.mubr.bf16.vlgmr.msra.gmra.mxu0 %v931_v37 }
 0x2c7   :  { %v1037_v38 = vpop.f32.mrf.mxu0 }
 0x2c8   :  { %v1038_v42 = vadd.f32 %v1159_v39, %v1037_v38 }
 0x2c9   :  { %v1248_v40 = vpop.f32.mrf.mxu0 }
 0x2cb   :  { %v1040_v41 = vpop.f32.mrf.mxu0 }
 0x2cc   :  { %v1041_v43 = vadd.f32 %v1159_v39, %v1040_v41 }
 0x2cd   :  { %v1249_v44 = vpop.f32.mrf.mxu0 }
 0x2ce   :  { %v1175_v45 = vpack.c.bf16 %v1041_v43, %v1038_v42 }
 0x2d0   :  { %1176 = vst [vmem:[%s1554_s7] sm:$0xff] %v1175_v45  }
 0x2d1   :  { %1058 = vsyncpa [#allocation3], 1 }
 0x2d2   :  { %1059 = vsyncpa [#allocation5], 1 }

</bundles_post_ra>
